<compile_context>
chip_gen: v7x
topology: tpu7x:2x2x1
jax: 0.10.0
libtpu: 0.0.40
codegen_flags: <defaults>
</compile_context>

<pallas_src>
import functools

import jax
import jax.numpy as jnp
from jax.experimental import pallas as pl
from jax.experimental.pallas import tpu as pltpu


def _cat_mm_kernel(x1_ref, x2_ref, rs_ref, cs_ref, v1_ref, v2_ref, *, k_total):
    k = pl.program_id(2)

    @pl.when(k == 0)
    def _init():
        v1_ref[...] = jnp.zeros_like(v1_ref)

    # Shared product accumulated straight into the resident f32 output block.
    v1_ref[...] += jnp.dot(x1_ref[...], x2_ref[...],
                           preferred_element_type=jnp.float32)

    @pl.when(k == pl.num_programs(2) - 1)
    def _finalize():
        p = v1_ref[...]
        rs = rs_ref[...]                       # (tm, 1) exact f32 rowsum(x1)
        cs = cs_ref[...]                       # (1, tn) exact f32 colsum(x2)
        c1 = jnp.float32(12.0 * 13.0 * k_total)    # +156*K
        c2 = jnp.float32(-30.0 * 26.0 * k_total)   # -780*K
        v2_ref[...] = p + 26.0 * rs - 30.0 * cs + c2
        v1_ref[...] = p + 13.0 * rs + 12.0 * cs + c1


def _round_up(x, m):
    return ((x + m - 1) // m) * m


def _pick_tile(dim, align, cap):
    """Smallest-waste tile (multiple of `align`); whole padded dim if it fits."""
    padded = _round_up(dim, align)
    if padded <= cap:
        return padded
    best_t, best_waste = align, _round_up(dim, align) - dim
    t = align
    while t <= cap:
        waste = _round_up(dim, t) - dim
        if waste < best_waste or (waste == best_waste and t > best_t):
            best_t, best_waste = t, waste
        t += align
    return best_t


def cat_mm(x1, x2):
    """Returns concatenate([(x1+12)@(x2+13), (x1-30)@(x2+26)], axis=1)."""
    M, K = x1.shape
    K2, N = x2.shape
    assert K == K2, "inner dimensions must match"

    x1 = x1.astype(jnp.float32)
    x2 = x2.astype(jnp.float32)

    # Tile selection: minimize zero-padding waste, bf16-friendly alignment.
    tm = _pick_tile(M, 16, 512)
    tn = _pick_tile(N, 128, 1024)
    tk = _pick_tile(K, 128, 1024)
    Mp, Np, Kp = _round_up(M, tm), _round_up(N, tn), _round_up(K, tk)

    # Keep both v7x TensorCores busy: split M when the parallel grid is 1x1.
    if (Mp // tm) * (Np // tn) == 1 and Mp >= 256:
        tm = _round_up((tm + 1) // 2, 16)
        Mp = _round_up(M, tm)

    grid = (Mp // tm, Np // tn, Kp // tk)

    # Exact f32 rank-1 correction terms, computed once (hoisted out of grid).
    rs = jnp.sum(x1, axis=1, keepdims=True)            # (M, 1)
    cs = jnp.sum(x2, axis=0, keepdims=True)            # (1, N)
    if Mp != M:
        rs = jnp.zeros((Mp, 1), jnp.float32).at[:M, :].set(rs)
    if Np != N:
        cs = jnp.zeros((1, Np), jnp.float32).at[:, :N].set(cs)

    # bf16 operands for the MXU; skip the pad copy when already tile-aligned.
    if (Mp, Kp) == (M, K):
        x1b = x1.astype(jnp.bfloat16)
    else:
        x1b = jnp.zeros((Mp, Kp), jnp.bfloat16).at[:M, :K].set(
            x1.astype(jnp.bfloat16))
    if (Kp, Np) == (K, N):
        x2b = x2.astype(jnp.bfloat16)
    else:
        x2b = jnp.zeros((Kp, Np), jnp.bfloat16).at[:K, :N].set(
            x2.astype(jnp.bfloat16))

    kernel = functools.partial(_cat_mm_kernel, k_total=K)

    v1p, v2p = pl.pallas_call(
        kernel,
        out_shape=(
            jax.ShapeDtypeStruct((Mp, Np), jnp.float32),
            jax.ShapeDtypeStruct((Mp, Np), jnp.float32),
        ),
        grid_spec=pltpu.PrefetchScalarGridSpec(
            num_scalar_prefetch=0,
            grid=grid,
            in_specs=[
                pl.BlockSpec((tm, tk), lambda i, j, k: (i, k)),   # x1 bf16
                pl.BlockSpec((tk, tn), lambda i, j, k: (k, j)),   # x2 bf16
                pl.BlockSpec((tm, 1), lambda i, j, k: (i, 0)),    # rowsum f32
                pl.BlockSpec((1, tn), lambda i, j, k: (0, j)),    # colsum f32
            ],
            out_specs=(
                pl.BlockSpec((tm, tn), lambda i, j, k: (i, j)),
                pl.BlockSpec((tm, tn), lambda i, j, k: (i, j)),
            ),
        ),
        compiler_params=pltpu.CompilerParams(
            dimension_semantics=("parallel", "parallel", "arbitrary"),
            vmem_limit_bytes=32 * 1024 * 1024,
        ),
    )(x1b, x2b, rs, cs)

    # Single fused copy for the axis-1 concat; slice only if padding was added.
    if (Mp, Np) == (M, N):
        return jnp.concatenate([v1p, v2p], axis=1)
    return jnp.concatenate([v1p[:M, :N], v2p[:M, :N]], axis=1)


def _reference(x1, x2):
    hi = jax.lax.Precision.HIGHEST
    v1 = jnp.matmul(x1 + 12.0, x2 + 13.0, precision=hi)
    v2 = jnp.matmul(x1 - 30.0, x2 + 26.0, precision=hi)
    return jnp.concatenate([v1, v2], axis=1)


if __name__ == "__main__":
    key = jax.random.PRNGKey(0)
    k1, k2, k3, k4 = jax.random.split(key, 4)

    # --- Module shape: torch.randn(3, 3) for both inputs -------------------
    x1 = jax.random.normal(k1, (3, 3), dtype=jnp.float32)
    x2 = jax.random.normal(k2, (3, 3), dtype=jnp.float32)
    out = cat_mm(x1, x2)
    jax.block_until_ready(out)
    ref = _reference(x1, x2)
    assert out.shape == (3, 6)
    assert jnp.allclose(out, ref, rtol=1e-3, atol=1e-3), "3x3 mismatch"

    # --- Secondary check exercising the multi-tile (i, j, k) grid path -----
    a = jax.random.normal(k3, (320, 1024), dtype=jnp.float32)
    b = jax.random.normal(k4, (1024, 640), dtype=jnp.float32)
    out2 = cat_mm(a, b)
    jax.block_until_ready(out2)
    ref2 = _reference(a, b)
    assert out2.shape == (320, 1280)
    assert jnp.allclose(out2, ref2, rtol=1e-4, atol=5e-2), "tiled-path mismatch"

    print("KERNEL_OK")
</pallas_src>

<mosaic_0001>
module attributes {stable_mosaic.version = 11 : i64} {
  func.func @_cat_mm_kernel(%arg0: i32, %arg1: i32, %arg2: i32, %arg3: memref<16x128xbf16, #tpu.memory_space<vmem>>, %arg4: memref<128x128xbf16, #tpu.memory_space<vmem>>, %arg5: memref<16x1xf32, #tpu.memory_space<vmem>>, %arg6: memref<1x128xf32, #tpu.memory_space<vmem>>, %arg7: memref<16x128xf32, #tpu.memory_space<vmem>>, %arg8: memref<16x128xf32, #tpu.memory_space<vmem>>) attributes {dimension_semantics = [#tpu.dimension_semantics<parallel>, #tpu.dimension_semantics<parallel>, #tpu.dimension_semantics<arbitrary>], iteration_bounds = array<i64: 1, 1, 1>, scalar_prefetch = 0 : i64, scratch_operands = 0 : i64, tpu.core_type = #tpu.core_type<tc>, window_params = [{transform_indices = @transform_0, window_bounds = array<i64: 16, 128>}, {transform_indices = @transform_1, window_bounds = array<i64: 128, 128>}, {transform_indices = @transform_2, window_bounds = array<i64: 16, 1>}, {transform_indices = @transform_3, window_bounds = array<i64: 1, 128>}, {transform_indices = @transform_4, window_bounds = array<i64: 16, 128>}, {transform_indices = @transform_5, window_bounds = array<i64: 16, 128>}]} {
    %c0_i32 = arith.constant 0 : i32
    %0 = arith.cmpi eq, %arg2, %c0_i32 : i32
    %1 = arith.extui %0 : i1 to i32
    %c0_i32_0 = arith.constant 0 : i32
    %2 = arith.cmpi ne, %1, %c0_i32_0 : i32
    scf.if %2 {
      %cst_10 = arith.constant 0.000000e+00 : f32
      %12 = vector.broadcast %cst_10 : f32 to vector<16x128xf32>
      %c0_11 = arith.constant 0 : index
      %c0_12 = arith.constant 0 : index
      %13 = vector.load %arg7[%c0_11, %c0_12] : memref<16x128xf32, #tpu.memory_space<vmem>>, vector<16x128xf32>
      tpu.vector_store %arg7[%c0_11, %c0_12], %12 {strides = array<i32>} : memref<16x128xf32, #tpu.memory_space<vmem>>, vector<16x128xf32>,
    } else {
    }
    %c0 = arith.constant 0 : index
    %c0_1 = arith.constant 0 : index
    %3 = vector.load %arg7[%c0, %c0_1] : memref<16x128xf32, #tpu.memory_space<vmem>>, vector<16x128xf32>
    %c0_2 = arith.constant 0 : index
    %c0_3 = arith.constant 0 : index
    %4 = vector.load %arg3[%c0_2, %c0_3] : memref<16x128xbf16, #tpu.memory_space<vmem>>, vector<16x128xbf16>
    %c0_4 = arith.constant 0 : index
    %c0_5 = arith.constant 0 : index
    %5 = vector.load %arg4[%c0_4, %c0_5] : memref<128x128xbf16, #tpu.memory_space<vmem>>, vector<128x128xbf16>
    %cst = arith.constant dense<0.000000e+00> : vector<16x128xf32>
    %6 = tpu.matmul %4, %5, %cst {dimension_numbers = #tpu.dot_dimension_numbers<[1], [0], [0], [1], [0, 0, 1, 1], [], []>} : vector<16x128xbf16>, vector<128x128xbf16>, vector<16x128xf32> -> vector<16x128xf32>
    %7 = arith.addf %3, %6 : vector<16x128xf32>
    %c0_6 = arith.constant 0 : index
    %c0_7 = arith.constant 0 : index
    %8 = vector.load %arg7[%c0_6, %c0_7] : memref<16x128xf32, #tpu.memory_space<vmem>>, vector<16x128xf32>
    tpu.vector_store %arg7[%c0_6, %c0_7], %7 {strides = array<i32>} : memref<16x128xf32, #tpu.memory_space<vmem>>, vector<16x128xf32>,
    %c0_i32_8 = arith.constant 0 : i32
    %9 = arith.cmpi eq, %arg2, %c0_i32_8 : i32
    %10 = arith.extui %9 : i1 to i32
    %c0_i32_9 = arith.constant 0 : i32
    %11 = arith.cmpi ne, %10, %c0_i32_9 : i32
    scf.if %11 {
      %c0_10 = arith.constant 0 : index
      %c0_11 = arith.constant 0 : index
      %12 = vector.load %arg7[%c0_10, %c0_11] : memref<16x128xf32, #tpu.memory_space<vmem>>, vector<16x128xf32>
      %c0_12 = arith.constant 0 : index
      %c0_13 = arith.constant 0 : index
      %13 = vector.load %arg5[%c0_12, %c0_13] : memref<16x1xf32, #tpu.memory_space<vmem>>, vector<16x1xf32>
      %c0_14 = arith.constant 0 : index
      %c0_15 = arith.constant 0 : index
      %14 = vector.load %arg6[%c0_14, %c0_15] : memref<1x128xf32, #tpu.memory_space<vmem>>, vector<1x128xf32>
      %cst_16 = arith.constant 2.600000e+01 : f32
      %15 = vector.broadcast %cst_16 : f32 to vector<16x1xf32>
      %16 = arith.mulf %15, %13 : vector<16x1xf32>
      %17 = vector.broadcast %16 : vector<16x1xf32> to vector<16x128xf32>
      %18 = arith.addf %12, %17 : vector<16x128xf32>
      %cst_17 = arith.constant 3.000000e+01 : f32
      %19 = vector.broadcast %cst_17 : f32 to vector<1x128xf32>
      %20 = arith.mulf %19, %14 : vector<1x128xf32>
      %21 = vector.broadcast %20 : vector<1x128xf32> to vector<16x128xf32>
      %22 = arith.subf %18, %21 : vector<16x128xf32>
      %cst_18 = arith.constant -2.340000e+03 : f32
      %23 = vector.broadcast %cst_18 : f32 to vector<16x128xf32>
      %24 = arith.addf %22, %23 : vector<16x128xf32>
      %c0_19 = arith.constant 0 : index
      %c0_20 = arith.constant 0 : index
      %25 = vector.load %arg8[%c0_19, %c0_20] : memref<16x128xf32, #tpu.memory_space<vmem>>, vector<16x128xf32>
      tpu.vector_store %arg8[%c0_19, %c0_20], %24 {strides = array<i32>} : memref<16x128xf32, #tpu.memory_space<vmem>>, vector<16x128xf32>,
      %cst_21 = arith.constant 1.300000e+01 : f32
      %26 = vector.broadcast %cst_21 : f32 to vector<16x1xf32>
      %27 = arith.mulf %26, %13 : vector<16x1xf32>
      %28 = vector.broadcast %27 : vector<16x1xf32> to vector<16x128xf32>
      %29 = arith.addf %12, %28 : vector<16x128xf32>
      %cst_22 = arith.constant 1.200000e+01 : f32
      %30 = vector.broadcast %cst_22 : f32 to vector<1x128xf32>
      %31 = arith.mulf %30, %14 : vector<1x128xf32>
      %32 = vector.broadcast %31 : vector<1x128xf32> to vector<16x128xf32>
      %33 = arith.addf %29, %32 : vector<16x128xf32>
      %cst_23 = arith.constant 4.680000e+02 : f32
      %34 = vector.broadcast %cst_23 : f32 to vector<16x128xf32>
      %35 = arith.addf %33, %34 : vector<16x128xf32>
      %c0_24 = arith.constant 0 : index
      %c0_25 = arith.constant 0 : index
      %36 = vector.load %arg7[%c0_24, %c0_25] : memref<16x128xf32, #tpu.memory_space<vmem>>, vector<16x128xf32>
      tpu.vector_store %arg7[%c0_24, %c0_25], %35 {strides = array<i32>} : memref<16x128xf32, #tpu.memory_space<vmem>>, vector<16x128xf32>,
    } else {
    }
    return
  }
  func.func @transform_0(%arg0: i32, %arg1: i32, %arg2: i32) -> (i32, i32) {
    %c0_i32 = arith.constant 0 : i32
    return %arg0, %arg2 : i32, i32
  }
  func.func @transform_1(%arg0: i32, %arg1: i32, %arg2: i32) -> (i32, i32) {
    %c0_i32 = arith.constant 0 : i32
    return %arg2, %arg1 : i32, i32
  }
  func.func @transform_2(%arg0: i32, %arg1: i32, %arg2: i32) -> (i32, i32) {
    %c0_i32 = arith.constant 0 : i32
    %c0_i32_0 = arith.constant 0 : i32
    return %arg0, %c0_i32 : i32, i32
  }
  func.func @transform_3(%arg0: i32, %arg1: i32, %arg2: i32) -> (i32, i32) {
    %c0_i32 = arith.constant 0 : i32
    %c0_i32_0 = arith.constant 0 : i32
    return %c0_i32, %arg1 : i32, i32
  }
  func.func @transform_4(%arg0: i32, %arg1: i32, %arg2: i32) -> (i32, i32) {
    %c0_i32 = arith.constant 0 : i32
    return %arg0, %arg1 : i32, i32
  }
  func.func @transform_5(%arg0: i32, %arg1: i32, %arg2: i32) -> (i32, i32) {
    %c0_i32 = arith.constant 0 : i32
    return %arg0, %arg1 : i32, i32
  }
}

</mosaic_0001>

<bundles_post_ra>
// kernel: tpu_custom_call.1
= control target key start
LH: loop header
LB: loop body
LE: loop exit
PB: predicated region body
PF: predicated region fallthrough
CT: control target
= control target key end

     0   :  { %11 = vsyncpa [#allocation3], 0  ;;  %s482_s0 = inlined_call_operand.vmem [shape: bf16[16,128], index: 0, kind: input, shape index: {}]   ;;  %s483_s1 = inlined_call_operand.hbm [shape: bf16[128,128], index: 1, kind: input, shape index: {}]   ;;  %s484_s2 = inlined_call_operand.vmem [shape: f32[16,1], index: 2, kind: input, shape index: {}]   ;;  %s485_s3 = inlined_call_operand.vmem [shape: f32[1,128], index: 3, kind: input, shape index: {}]   ;;  %s486_s4 = inlined_call_operand.hbm [shape: f32[16,128], index: 4, kind: output, shape index: {0}]   ;;  %s487_s5 = inlined_call_operand.hbm [shape: f32[16,128], index: 5, kind: output, shape index: {1}]  }
   0x1   :  { %12 = vsyncpa [#allocation4], 0 }
   0x2   :  { %13 = vsyncpa [#allocation7], 0  ;;  %s387_s18 = smov [#allocation2]   ;;  %s315_s22 = scalar_lea.hbm %s483_s1, 1024 }
   0x3   :  { %s21_s19 = sshll.u32 %s387_s18, 4  ;;  %p316_p0 = scmp.ne.s32.totalorder %s483_s1, %s315_s22  ;;  %s22_s19 = int_to_ptr.vmem [resolvable:$true] %s21_s19 }
   0x4   :  { %p319_p1 = scmp.lt.u32.totalorder %s315_s22, %s483_s1 }
   0x6   :  { %p321_p2 = pnand %p319_p1, %p316_p0 }
   0x8   :  { %324 = shalt.err (!%p321_p2)
}
   0x9   :  { %s325_s27 = scalar_lea.vmem %s22_s19, 1024  ;;  %p330_p4 = scmp.lt.s32.totalorder %s22_s19, %s22_s19 }
   0xa   :  { %p326_p3 = scmp.ne.s32.totalorder %s22_s19, %s325_s27  ;;  %p331_p5 = scmp.lt.s32.totalorder %s325_s27, %s325_s27 }
   0xc   :  { %p332_p6 = por %p331_p5, %p330_p4 }
   0xe   :  { %p333_p7 = pnand %p332_p6, %p326_p3 }
  0x10   :  { %336 = shalt.err (!%p333_p7)
}
  0x11   :  { %s388_s28 = smov 64   ;;  %s389_s29 = smov 4  }
  0x12   :  { %27 = dma.hbm_to_vmem [thread:$0]  %s483_s1, 1024, %s22_s19, [#allocation3], %s388_s28, %s388_s28, %s389_s29  }
  0x13   :  { %381 = dma.done.wait [#allocation3], 1024  }
  0x14   :  { %382 = vsyncadd [#allocation3], 4294966272  ;;  %v390_v0 = vmov 0.0   ;;  %vm391_vm0 = vmmov 0   ;;  %v392_v1 = vmov 0   ;;  %v306_v2 = vld [vmem:[#allocation2] sm:$0xff]   ;;  %v185_v17 = vlaneseq }
  0x15   :  { %274 = vmatprep.subr.bf16.mxu0 %v390_v0  ;;  %290 = vmatprep.mubr.msk.bf16.mxu0 %vm391_vm0, %v390_v0  ;;  %v307_v3 = vld [vmem:[#allocation2 + $0x8] sm:$0xff]   ;;  %v308_v4 = vld [vmem:[#allocation2 + $0x10] sm:$0xff]   ;;  %v166_v5 = vld [vmem:[%s484_s2] sm:$0xff]  ;;  %s394_s13 = smov [#allocation6]  }
  0x16   :  { %305 = vset.pattern.permute.xlu1 %v392_v1  ;;  %304 = vset.pattern.permute.xlu0 %v392_v1  ;;  %v167_v6 = vld [vmem:[%s484_s2 + $0x8] sm:$0xff]  ;;  %v309_v7 = vld [vmem:[#allocation2 + $0x18] sm:$0xff]   ;;  %v196_v8 = vmul.f32 13.0, %v166_v5  ;;  %v169_v9 = vmul.f32 26.0, %v166_v5  ;;  %v310_v12 = vld [vmem:[#allocation2 + $0x20] sm:$0xff]   ;;  %v186_v18 = vshrl.u32 %v185_v17, 7 }
  0x17   :  { %275 = vmatpush3.bf16.msra.mxu0 %v306_v2  ;;  %v197_v10 = vmul.f32 13.0, %v167_v6  ;;  %v170_v11 = vmul.f32 26.0, %v167_v6  ;;  %v311_v13 = vld [vmem:[#allocation2 + $0x28] sm:$0xff]   ;;  %v312_v14 = vld [vmem:[#allocation2 + $0x30] sm:$0xff]   ;;  %v313_v15 = vld [vmem:[#allocation2 + $0x38] sm:$0xff]   ;;  %s240_s14 = sshll.u32 %s394_s13, 4  ;;  %s451_s14 = int_to_ptr.vmem [resolvable:$true] %s240_s14 }
  0x18   :  { %276 = vmatprep.subr.bf16.mxu0 %v390_v0  ;;  %200 = vperm.xlu1 %305, %v196_v8   ;;  %v314_v16 = vld [vmem:[%s482_s0] sm:$0xff]   ;;  %v187_v20 = vsub.s32 0, %v186_v18  ;;  %s393_s0 = smov [#allocation5]  }
  0x19   :  { %173 = vperm.xlu0 %304, %v169_v9   ;;  %v168_v19 = vld [vmem:[%s485_s3] sm:$0x1]  ;;  %s228_s3 = sshll.u32 %s393_s0, 4  ;;  %s229_s3 = int_to_ptr.vmem [resolvable:$true] %s228_s3 }
  0x1a   :  { %v210_v21 = vmul.f32 12.0, %v168_v19  ;;  %v183_v22 = vmul.f32 30.0, %v168_v19  ;;  %s337_s15 = scalar_lea.vmem %s229_s3, 256  ;;  %p342_p9 = scmp.lt.s32.totalorder %s229_s3, %s229_s3 }
  0x1b   :  { %277 = vmatpush3.bf16.msra.mxu0 %v307_v3  ;;  %p338_p8 = scmp.ne.s32.totalorder %s229_s3, %s337_s15  ;;  %p343_p10 = scmp.lt.s32.totalorder %s337_s15, %s337_s15 }
  0x1c   :  { %278 = vmatprep.subr.bf16.mxu0 %v390_v0  ;;  %205 = vperm.xlu1 %305, %v197_v10   ;;  %v215_v27 = vrot.slane %v210_v21, %v187_v20  ;;  %v188_v28 = vrot.slane %v183_v22, %v187_v20 }
  0x1d   :  { %178 = vperm.xlu0 %304, %v170_v11   ;;  %p344_p11 = por %p343_p10, %p342_p9 }
  0x1f   :  { %279 = vmatpush3.bf16.msra.mxu0 %v308_v4  ;;  %p345_p12 = pnand %p344_p11, %p338_p8 }
  0x20   :  { %280 = vmatprep.subr.bf16.mxu0 %v390_v0 }
  0x23   :  { %281 = vmatpush3.bf16.msra.mxu0 %v309_v7 }
  0x24   :  { %282 = vmatprep.subr.bf16.mxu0 %v390_v0 }
  0x27   :  { %283 = vmatpush3.bf16.msra.mxu0 %v310_v12 }
  0x28   :  { %284 = vmatprep.subr.bf16.mxu0 %v390_v0 }
  0x2b   :  { %285 = vmatpush3.bf16.msra.mxu0 %v311_v13 }
  0x2c   :  { %286 = vmatprep.subr.bf16.mxu0 %v390_v0 }
  0x2f   :  { %287 = vmatpush3.bf16.msra.mxu0 %v312_v14 }
  0x30   :  { %288 = vmatprep.subr.bf16.mxu0 %v390_v0 }
  0x33   :  { %289 = vmatpush3.bf16.msra.mxu0 %v313_v15 }
  0x36   :  { %291 = vmatmul.mubr.bf16.vlgmr.msra.gmra.mrb[0].mxu0 %v314_v16 }
  0x97   :  { %v201_v23 = vpop.permute.xlu1 %200 }
  0x98   :  { %v174_v24 = vpop.permute.xlu0 %173 }
  0x9b   :  { %v206_v33 = vpop.permute.xlu1 %205 }
  0x9c   :  { %v179_v34 = vpop.permute.xlu0 %178 }
 0x109   :  { %v150_v25 = vpop.f32.mrb[0].mxu0 }
 0x10a   :  { %v292_v26 = vpop.f32.mrb[1].mxu0  ;;  %v208_v31 = vadd.f32 %v201_v23, %v150_v25  ;;  %v181_v32 = vadd.f32 %v174_v24, %v150_v25 }
 0x10b   :  { %v153_v29 = vpop.f32.mrb[2].mxu0 }
 0x10c   :  { %v293_v30 = vpop.f32.mrb[3].mxu0  ;;  %v217_v35 = vadd.f32 %v215_v27, %v208_v31  ;;  %v190_v36 = vsub.f32 %v181_v32, %v188_v28  ;;  %v209_v37 = vadd.f32 %v206_v33, %v153_v29  ;;  %v182_v38 = vadd.f32 %v179_v34, %v153_v29 }
 0x10e   :  { %v219_v39 = vadd.f32 468.0, %v217_v35  ;;  %v192_v40 = vadd.f32 -2340.0, %v190_v36  ;;  %v218_v41 = vadd.f32 %v215_v27, %v209_v37  ;;  %v191_v42 = vsub.f32 %v182_v38, %v188_v28 }
 0x110   :  { %221 = vst [vmem:[#allocation5] sm:$0xff] %v219_v39  ;;  %194 = vst [vmem:[#allocation6] sm:$0xff] %v192_v40  ;;  %v220_v43 = vadd.f32 468.0, %v218_v41  ;;  %v193_v44 = vadd.f32 -2340.0, %v191_v42 }
 0x112   :  { %222 = vst [vmem:[#allocation5 + $0x8] sm:$0xff] %v220_v43  ;;  %195 = vst [vmem:[#allocation6 + $0x8] sm:$0xff] %v193_v44 }
 0x113   :  { %348 = shalt.err (!%p345_p12)
}
 0x114   :  { %s349_s18 = scalar_lea.hbm %s486_s4, 256 }
 0x115   :  { %p350_p13 = scmp.ne.s32.totalorder %s486_s4, %s349_s18  ;;  %p353_p0 = scmp.lt.u32.totalorder %s349_s18, %s486_s4 }
 0x117   :  { %p355_p1 = pnand %p353_p0, %p350_p13 }
 0x119   :  { %358 = shalt.err (!%p355_p1)
}
 0x11a   :  { %s395_s23 = smov 128   ;;  %s396_s24 = smov 8  }
 0x11b   :  { %234 = dma.vmem_to_hbm [thread:$0]  %s229_s3, 256, %s486_s4, [#allocation4], %s395_s23, %s395_s23, %s396_s24  }
 0x11c   :  { %s359_s27 = scalar_lea.vmem %s451_s14, 256  ;;  %p364_p3 = scmp.lt.s32.totalorder %s451_s14, %s451_s14 }
 0x11d   :  { %p360_p2 = scmp.ne.s32.totalorder %s451_s14, %s359_s27  ;;  %p365_p4 = scmp.lt.s32.totalorder %s359_s27, %s359_s27 }
 0x11f   :  { %p366_p5 = por %p365_p4, %p364_p3 }
 0x121   :  { %p367_p6 = pnand %p366_p5, %p360_p2 }
 0x123   :  { %370 = shalt.err (!%p367_p6)
}
 0x124   :  { %s371_s30 = scalar_lea.hbm %s487_s5, 256 }
 0x125   :  { %p372_p7 = scmp.ne.s32.totalorder %s487_s5, %s371_s30  ;;  %p375_p8 = scmp.lt.u32.totalorder %s371_s30, %s487_s5 }
 0x127   :  { %p377_p9 = pnand %p375_p8, %p372_p7 }
 0x129   :  { %380 = shalt.err (!%p377_p9)
}
 0x12a   :  { %246 = dma.vmem_to_hbm [thread:$0]  %s451_s14, 256, %s487_s5, [#allocation7], %s395_s23, %s395_s23, %s396_s24  }
 0x12b   :  { %383 = dma.done.wait [#allocation4], 256  }
 0x12c   :  { %384 = vsyncadd [#allocation4], 4294967040 }
 0x12d   :  { %385 = dma.done.wait [#allocation7], 256  }
 0x12e   :  { %386 = vsyncadd [#allocation7], 4294967040 }
 0x12f   :  { %253 = vsyncpa [#allocation3], 1 }
 0x130   :  { %254 = vsyncpa [#allocation4], 1 }
 0x131   :  { %255 = vsyncpa [#allocation7], 1 }

</bundles_post_ra>
